<compile_context>
chip_gen: v6e
topology: v6e:2x2x1
jax: 0.10.0
libtpu: 0.0.40
codegen_flags: <defaults>
</compile_context>

<pallas_src>
import jax
import jax.numpy as jnp
from jax.experimental import pallas as pl
from jax.experimental.pallas import tpu as pltpu

_LANE = 128
_ROW_ALIGN = 16            # bf16-friendly sublane granularity for row padding
_TM_MAX = 512              # row-tile height for the streamed (A+I) tiles


def _round_up(v, m):
    return (v + m - 1) // m * m


def _tile_plan(n):
    """Pick row-tile height TM and padded node count N_p (N_p % TM == 0)."""
    n_al = max(_round_up(n, _ROW_ALIGN), _ROW_ALIGN)
    tm = min(_TM_MAX, n_al)
    n_p = _round_up(n_al, tm)
    return n_p, tm


def _fused_gcn_kernel(counts_ref, dinv_ref, m0_ref, b1_ref, w2_ref, b2_ref,
                      out_ref, h_ref):
    """Two-pass fused 2-layer GCN over row tiles of the (A+I) count matrix.

    grid = (layer, row_tile).  Layer 0 writes the D^{-1/2}-scaled hidden
    activation of its row tile into the persistent VMEM scratch `h_ref`;
    layer 1 reads the full scratch (aggregation needs every node's hidden
    state) and writes its output row tile.  Both layers share the same inner
    form `counts_tile @ [N_p, 128]` on the MXU with f32 accumulation.
    """
    tm = counts_ref.shape[0]
    i = pl.program_id(1)
    row0 = pl.multiple_of(i * tm, _ROW_ALIGN)
    dinv = dinv_ref[...]                      # (TM, 1) f32 = D^{-1/2} for this row tile

    @pl.when(pl.program_id(0) == 0)
    def _layer0():
        # A_hat @ (X W1) = dinv * ((A+I) @ (dinv * X W1));   m0 = dinv * (X @ W1).
        t = jnp.dot(counts_ref[...], m0_ref[...],
                    preferred_element_type=jnp.float32)
        h = jnp.maximum(dinv * t + b1_ref[...], 0.0)          # bias + ReLU in f32
        # Dropout(0.1) is identity in eval mode.
        # Store H pre-scaled by dinv so layer 1 is again `counts @ [N_p, 128]`.
        h_ref[pl.ds(row0, tm), :] = (dinv * h).astype(jnp.bfloat16)

    @pl.when(pl.program_id(0) == 1)
    def _layer1():
        t = jnp.dot(counts_ref[...], h_ref[...],
                    preferred_element_type=jnp.float32)
        t = (dinv * t).astype(jnp.bfloat16)
        out = jnp.dot(t, w2_ref[...], preferred_element_type=jnp.float32)
        out_ref[...] = (out + b2_ref[...]).astype(out_ref.dtype)


def build_graph_operands(x, edge_index, w1):
    """Build padded kernel operands directly at final shape/dtype.

    Returns:
      counts  : (N_p, N_p) bf16 -- (A + I) edge counts (exact small integers).
      dinv_col: (N_p, 1)   f32  -- D^{-1/2} (0 on padded rows).
      m0      : (N_p, Fh_p) bf16 -- D^{-1/2} * (X @ W1), the layer-0 RHS.
      n_p, tm : padded node count and row-tile height.
    """
    n = x.shape[0]
    n_p, tm = _tile_plan(n)
    c_hidden = w1.shape[1]
    f_hid_p = max(_round_up(c_hidden, _LANE), _LANE)

    src, dst = edge_index[0], edge_index[1]
    # Single scatter-add build at padded shape in bf16 (small integer counts are
    # exact in bf16) -- no f32 N^2 temp, no separate padded copy.
    counts = jnp.zeros((n_p, n_p), jnp.bfloat16)
    counts = counts.at[dst, src].add(jnp.ones(src.shape, jnp.bfloat16))  # A[dst,src] += 1
    diag = jnp.arange(n)
    counts = counts.at[diag, diag].add(jnp.ones((n,), jnp.bfloat16))     # + I (self loops)

    deg = jnp.sum(counts, axis=-1, dtype=jnp.float32)                    # (N_p,)
    dinv = jnp.where(deg > 0.0, jax.lax.rsqrt(deg), 0.0)                 # 0 on padding
    dinv_col = dinv[:, None]

    # Fold X @ W1 and the right-hand D^{-1/2} into one small [N, C_hidden] operand.
    m0 = (x.astype(jnp.float32) @ w1) * dinv[:n, None]
    m0_p = jnp.zeros((n_p, f_hid_p), jnp.bfloat16).at[:n, :c_hidden].set(
        m0.astype(jnp.bfloat16))
    return counts, dinv_col, m0_p, n_p, tm


def gnn_forward_fused(counts, dinv_col, m0, b1, w2, b2, n, tm):
    """Fused, row-tiled 2-layer GCN forward."""
    n_p, f_hid_p = m0.shape
    c_hidden, c_out = w2.shape
    f_out_p = max(_round_up(c_out, _LANE), _LANE)
    n_tiles = n_p // tm

    w2_p = jnp.zeros((f_hid_p, f_out_p), jnp.bfloat16).at[:c_hidden, :c_out].set(
        w2.astype(jnp.bfloat16))
    b1_p = jnp.zeros((1, f_hid_p), jnp.float32).at[0, :b1.shape[0]].set(b1)
    b2_p = jnp.zeros((1, f_out_p), jnp.float32).at[0, :c_out].set(b2)

    out_p = pl.pallas_call(
        _fused_gcn_kernel,
        out_shape=jax.ShapeDtypeStruct((n_p, f_out_p), jnp.float32),
        grid_spec=pltpu.PrefetchScalarGridSpec(
            num_scalar_prefetch=0,
            grid=(2, n_tiles),          # (layer, row tile): row tiles are pipelined
            in_specs=[
                # Dominant HBM stream: (TM, N_p) row tile of (A+I), streamed once
                # per layer and double-buffered by the BlockSpec pipeline.
                pl.BlockSpec((tm, n_p), lambda l, i: (i, 0)),
                pl.BlockSpec((tm, 1), lambda l, i: (i, 0)),             # D^{-1/2} rows
                pl.BlockSpec((n_p, f_hid_p), lambda l, i: (0, 0)),      # M0 (resident)
                pl.BlockSpec((1, f_hid_p), lambda l, i: (0, 0)),        # b1
                pl.BlockSpec((f_hid_p, f_out_p), lambda l, i: (0, 0)),  # W2
                pl.BlockSpec((1, f_out_p), lambda l, i: (0, 0)),        # b2
            ],
            # l*i: during layer 0 every step maps to block 0 (nothing flushed early);
            # each output row tile is flushed exactly once, after its layer-1 step.
            out_specs=pl.BlockSpec((tm, f_out_p), lambda l, i: (l * i, 0)),
            # Persistent hidden state H (pre-scaled by D^{-1/2}), bf16 in VMEM.
            scratch_shapes=[pltpu.VMEM((n_p, f_hid_p), jnp.bfloat16)],
        ),
        compiler_params=pltpu.CompilerParams(
            # Layer-1 tiles read the FULL H scratch produced by all layer-0 tiles
            # and TensorCores have private VMEM, so the row-tile axis is not
            # independent across the layer axis: keep both axes "arbitrary"
            # (megacore sharding of this fused single call would be incorrect).
            dimension_semantics=("arbitrary", "arbitrary"),
            # ~20 MiB live at TM=512 / N_p=8192; 48 MiB fits v7x's 64 MiB physical
            # VMEM and lifts the 16 / 32 MiB default scoped limits on v5e / v6e.
            vmem_limit_bytes=48 * 1024 * 1024,
        ),
    )(counts, dinv_col, m0, b1_p, w2_p, b2_p)

    return out_p[:n, :c_out]


def init_params(key, c_in, c_hidden, c_out):
    """Glorot-uniform init; weights stored pre-transposed as [F_in, F_out]."""
    k1, k2 = jax.random.split(key)

    def glorot(k, fan_in, fan_out):
        limit = jnp.sqrt(6.0 / (fan_in + fan_out))
        return jax.random.uniform(k, (fan_in, fan_out), jnp.float32, -limit, limit)

    return {
        "w1": glorot(k1, c_in, c_hidden),
        "b1": jnp.zeros((c_hidden,), jnp.float32),
        "w2": glorot(k2, c_hidden, c_out),
        "b2": jnp.zeros((c_out,), jnp.float32),
    }


def gnn_model_forward(params, x, edge_index):
    """GNNModel.forward: GCNConv -> ReLU -> Dropout(identity) -> GCNConv (fused)."""
    n = x.shape[0]
    counts, dinv_col, m0, _, tm = build_graph_operands(x, edge_index, params["w1"])
    return gnn_forward_fused(counts, dinv_col, m0, params["b1"],
                             params["w2"], params["b2"], n, tm)


def _reference_forward(params, x, edge_index):
    """Pure-JAX f32 reference for a loose numerical check."""
    n = x.shape[0]
    src, dst = edge_index[0], edge_index[1]
    a = jnp.zeros((n, n), jnp.float32).at[dst, src].add(1.0)
    a = a + jnp.eye(n, dtype=jnp.float32)
    deg = jnp.sum(a, axis=1)
    dinv = jnp.where(deg > 0, 1.0 / jnp.sqrt(deg), 0.0)
    a_hat = dinv[:, None] * a * dinv[None, :]
    h = jnp.maximum(a_hat @ x @ params["w1"] + params["b1"], 0.0)
    return a_hat @ h @ params["w2"] + params["b2"]


if __name__ == "__main__":
    key = jax.random.PRNGKey(0)
    k_x, k_e, k_p = jax.random.split(key, 3)

    N = 16         # number of nodes
    C_IN = 4       # input feature dim
    C_HIDDEN = 32  # hidden feature dim
    C_OUT = 8      # output classes
    E = 40         # number of directed edges

    x = jax.random.normal(k_x, (N, C_IN), dtype=jnp.float32)
    edge_index = jax.random.randint(k_e, (2, E), 0, N, dtype=jnp.int32)
    params = init_params(k_p, C_IN, C_HIDDEN, C_OUT)

    out = gnn_model_forward(params, x, edge_index)
    out = jax.block_until_ready(out)
    assert out.shape == (N, C_OUT), out.shape

    # Loose tolerance: kernel uses bf16 MXU operands with f32 accumulation
    # (edge counts are exact in bf16; D^{-1/2} scaling stays f32).
    ref = _reference_forward(params, x, edge_index)
    assert jnp.allclose(out, ref, atol=5e-2, rtol=5e-2), float(
        jnp.max(jnp.abs(out - ref)))

    print("KERNEL_OK")
</pallas_src>

<mosaic_0001>
module attributes {stable_mosaic.version = 11 : i64} {
  func.func @_fused_gcn_kernel(%arg0: i32, %arg1: i32, %arg2: memref<16x16xbf16, #tpu.memory_space<vmem>>, %arg3: memref<16x1xf32, #tpu.memory_space<vmem>>, %arg4: memref<16x128xbf16, #tpu.memory_space<vmem>>, %arg5: memref<1x128xf32, #tpu.memory_space<vmem>>, %arg6: memref<128x128xbf16, #tpu.memory_space<vmem>>, %arg7: memref<1x128xf32, #tpu.memory_space<vmem>>, %arg8: memref<16x128xf32, #tpu.memory_space<vmem>>, %arg9: memref<16x128xbf16, #tpu.memory_space<vmem>>) attributes {dimension_semantics = [#tpu.dimension_semantics<arbitrary>, #tpu.dimension_semantics<arbitrary>], iteration_bounds = array<i64: 2, 1>, scalar_prefetch = 0 : i64, scratch_operands = 1 : i64, tpu.core_type = #tpu.core_type<tc>, window_params = [{transform_indices = @transform_0, window_bounds = array<i64: 16, 16>}, {transform_indices = @transform_1, window_bounds = array<i64: 16, 1>}, {pipeline_mode = #tpu.pipeline_mode<synchronous>, transform_indices = @transform_2, window_bounds = array<i64: 16, 128>}, {pipeline_mode = #tpu.pipeline_mode<synchronous>, transform_indices = @transform_3, window_bounds = array<i64: 1, 128>}, {pipeline_mode = #tpu.pipeline_mode<synchronous>, transform_indices = @transform_4, window_bounds = array<i64: 128, 128>}, {pipeline_mode = #tpu.pipeline_mode<synchronous>, transform_indices = @transform_5, window_bounds = array<i64: 1, 128>}, {transform_indices = @transform_6, window_bounds = array<i64: 16, 128>}]} {
    %c16_i32 = arith.constant 16 : i32
    %0 = arith.muli %arg1, %c16_i32 : i32
    %1 = tpu.assume_multiple %0, 16 : i32
    %c0 = arith.constant 0 : index
    %c0_0 = arith.constant 0 : index
    %2 = vector.load %arg3[%c0, %c0_0] : memref<16x1xf32, #tpu.memory_space<vmem>>, vector<16x1xf32>
    %c0_i32 = arith.constant 0 : i32
    %3 = arith.cmpi eq, %arg0, %c0_i32 : i32
    %4 = arith.extui %3 : i1 to i32
    %c0_i32_1 = arith.constant 0 : i32
    %5 = arith.cmpi ne, %4, %c0_i32_1 : i32
    scf.if %5 {
      %c0_3 = arith.constant 0 : index
      %c0_4 = arith.constant 0 : index
      %9 = vector.load %arg2[%c0_3, %c0_4] : memref<16x16xbf16, #tpu.memory_space<vmem>>, vector<16x16xbf16>
      %c0_5 = arith.constant 0 : index
      %c0_6 = arith.constant 0 : index
      %10 = vector.load %arg4[%c0_5, %c0_6] : memref<16x128xbf16, #tpu.memory_space<vmem>>, vector<16x128xbf16>
      %cst = arith.constant dense<0.000000e+00> : vector<16x128xf32>
      %11 = tpu.matmul %9, %10, %cst {dimension_numbers = #tpu.dot_dimension_numbers<[1], [0], [0], [1], [0, 0, 1, 1], [], []>} : vector<16x16xbf16>, vector<16x128xbf16>, vector<16x128xf32> -> vector<16x128xf32>
      %12 = vector.broadcast %2 : vector<16x1xf32> to vector<16x128xf32>
      %13 = arith.mulf %12, %11 : vector<16x128xf32>
      %c0_7 = arith.constant 0 : index
      %c0_8 = arith.constant 0 : index
      %14 = vector.load %arg5[%c0_7, %c0_8] : memref<1x128xf32, #tpu.memory_space<vmem>>, vector<1x128xf32>
      %15 = vector.broadcast %14 : vector<1x128xf32> to vector<16x128xf32>
      %16 = arith.addf %13, %15 : vector<16x128xf32>
      %cst_9 = arith.constant 0.000000e+00 : f32
      %17 = vector.broadcast %cst_9 : f32 to vector<16x128xf32>
      %18 = arith.maximumf %16, %17 : vector<16x128xf32>
      %19 = vector.broadcast %2 : vector<16x1xf32> to vector<16x128xf32>
      %20 = arith.mulf %19, %18 : vector<16x128xf32>
      %21 = arith.truncf %20 : vector<16x128xf32> to vector<16x128xbf16>
      %22 = arith.index_cast %1 : i32 to index
      %c0_10 = arith.constant 0 : index
      %23 = vector.load %arg9[%22, %c0_10] : memref<16x128xbf16, #tpu.memory_space<vmem>>, vector<16x128xbf16>
      tpu.vector_store %arg9[%22, %c0_10], %21 {strides = array<i32>} : memref<16x128xbf16, #tpu.memory_space<vmem>>, vector<16x128xbf16>,
    } else {
    }
    %c1_i32 = arith.constant 1 : i32
    %6 = arith.cmpi eq, %arg0, %c1_i32 : i32
    %7 = arith.extui %6 : i1 to i32
    %c0_i32_2 = arith.constant 0 : i32
    %8 = arith.cmpi ne, %7, %c0_i32_2 : i32
    scf.if %8 {
      %c0_3 = arith.constant 0 : index
      %c0_4 = arith.constant 0 : index
      %9 = vector.load %arg2[%c0_3, %c0_4] : memref<16x16xbf16, #tpu.memory_space<vmem>>, vector<16x16xbf16>
      %c0_5 = arith.constant 0 : index
      %c0_6 = arith.constant 0 : index
      %10 = vector.load %arg9[%c0_5, %c0_6] : memref<16x128xbf16, #tpu.memory_space<vmem>>, vector<16x128xbf16>
      %cst = arith.constant dense<0.000000e+00> : vector<16x128xf32>
      %11 = tpu.matmul %9, %10, %cst {dimension_numbers = #tpu.dot_dimension_numbers<[1], [0], [0], [1], [0, 0, 1, 1], [], []>} : vector<16x16xbf16>, vector<16x128xbf16>, vector<16x128xf32> -> vector<16x128xf32>
      %12 = vector.broadcast %2 : vector<16x1xf32> to vector<16x128xf32>
      %13 = arith.mulf %12, %11 : vector<16x128xf32>
      %14 = arith.truncf %13 : vector<16x128xf32> to vector<16x128xbf16>
      %c0_7 = arith.constant 0 : index
      %c0_8 = arith.constant 0 : index
      %15 = vector.load %arg6[%c0_7, %c0_8] : memref<128x128xbf16, #tpu.memory_space<vmem>>, vector<128x128xbf16>
      %cst_9 = arith.constant dense<0.000000e+00> : vector<16x128xf32>
      %16 = tpu.matmul %14, %15, %cst_9 {dimension_numbers = #tpu.dot_dimension_numbers<[1], [0], [0], [1], [0, 0, 1, 1], [], []>} : vector<16x128xbf16>, vector<128x128xbf16>, vector<16x128xf32> -> vector<16x128xf32>
      %c0_10 = arith.constant 0 : index
      %c0_11 = arith.constant 0 : index
      %17 = vector.load %arg7[%c0_10, %c0_11] : memref<1x128xf32, #tpu.memory_space<vmem>>, vector<1x128xf32>
      %18 = vector.broadcast %17 : vector<1x128xf32> to vector<16x128xf32>
      %19 = arith.addf %16, %18 : vector<16x128xf32>
      %c0_12 = arith.constant 0 : index
      %c0_13 = arith.constant 0 : index
      %20 = vector.load %arg8[%c0_12, %c0_13] : memref<16x128xf32, #tpu.memory_space<vmem>>, vector<16x128xf32>
      tpu.vector_store %arg8[%c0_12, %c0_13], %19 {strides = array<i32>} : memref<16x128xf32, #tpu.memory_space<vmem>>, vector<16x128xf32>,
    } else {
    }
    return
  }
  func.func @transform_0(%arg0: i32, %arg1: i32) -> (i32, i32) {
    %c0_i32 = arith.constant 0 : i32
    %c0_i32_0 = arith.constant 0 : i32
    return %arg1, %c0_i32 : i32, i32
  }
  func.func @transform_1(%arg0: i32, %arg1: i32) -> (i32, i32) {
    %c0_i32 = arith.constant 0 : i32
    %c0_i32_0 = arith.constant 0 : i32
    return %arg1, %c0_i32 : i32, i32
  }
  func.func @transform_2(%arg0: i32, %arg1: i32) -> (i32, i32) {
    %c0_i32 = arith.constant 0 : i32
    %c0_i32_0 = arith.constant 0 : i32
    %c0_i32_1 = arith.constant 0 : i32
    return %c0_i32, %c0_i32_0 : i32, i32
  }
  func.func @transform_3(%arg0: i32, %arg1: i32) -> (i32, i32) {
    %c0_i32 = arith.constant 0 : i32
    %c0_i32_0 = arith.constant 0 : i32
    %c0_i32_1 = arith.constant 0 : i32
    return %c0_i32, %c0_i32_0 : i32, i32
  }
  func.func @transform_4(%arg0: i32, %arg1: i32) -> (i32, i32) {
    %c0_i32 = arith.constant 0 : i32
    %c0_i32_0 = arith.constant 0 : i32
    %c0_i32_1 = arith.constant 0 : i32
    return %c0_i32, %c0_i32_0 : i32, i32
  }
  func.func @transform_5(%arg0: i32, %arg1: i32) -> (i32, i32) {
    %c0_i32 = arith.constant 0 : i32
    %c0_i32_0 = arith.constant 0 : i32
    %c0_i32_1 = arith.constant 0 : i32
    return %c0_i32, %c0_i32_0 : i32, i32
  }
  func.func @transform_6(%arg0: i32, %arg1: i32) -> (i32, i32) {
    %0 = arith.muli %arg0, %arg1 : i32
    %c0_i32 = arith.constant 0 : i32
    %c0_i32_0 = arith.constant 0 : i32
    return %0, %c0_i32 : i32, i32
  }
}

</mosaic_0001>

<bundles_post_ra>
// kernel: tpu_custom_call.1
= control target key start
LH: loop header
LB: loop body
LE: loop exit
PB: predicated region body
PF: predicated region fallthrough
CT: control target
= control target key end

     0   :  { %11 = vsyncpa [#allocation4], 0  ;;  %s1097_s0 = inlined_call_operand.vmem [shape: bf16[16,16], index: 0, kind: input, shape index: {}]   ;;  %s1098_s1 = inlined_call_operand.vmem [shape: f32[16,1], index: 1, kind: input, shape index: {}]   ;;  %s1099_s2 = inlined_call_operand.vmem [shape: bf16[16,128], index: 2, kind: input, shape index: {}]   ;;  %s1100_s3 = inlined_call_operand.vmem [shape: f32[1,128], index: 3, kind: input, shape index: {}]   ;;  %s1101_s4 = inlined_call_operand.hbm [shape: bf16[128,128], index: 4, kind: input, shape index: {}]   ;;  %s1102_s5 = inlined_call_operand.vmem [shape: f32[1,128], index: 5, kind: input, shape index: {}]   ;;  %s1103_s6 = inlined_call_operand.hbm [shape: f32[16,128], index: 6, kind: output, shape index: {}]  }
   0x1   :  { %12 = vsyncpa [#allocation5], 0 }
   0x2   :  { %14 = vsyncpa [#allocation5 + $0x1], 0  ;;  %s1004_s21 = smov 0   ;;  %s1006_s22 = smov 0  }
   0x3   :  { %s1008_s23 = smov 0  }
   0x4 LB: > { %s720_s24 = sadd.s32 4294967295, %s955_s23   ;;  %s721_s25 = sadd.s32 4294967294, %s955_s23   ;;  %s955_s23 = sphi %s1008_s23, %s20_s23   ;;  %s951_s22 = sphi %s1006_s22, %s1108_s22   ;;  %s947_s21 = sphi %s1004_s21, %s1107_s21  }
   0x5   : > { %s32_s26 = sadd.s32 1, %s951_s22  ;;  %p722_p0 = scmp.ge.s32.totalorder %s955_s23, 1 }
   0x6   : > { %p34_p1 = scmp.ge.s32.totalorder %s32_s26, 2  ;;  %p201_p2 = scmp.lt.s32.totalorder %s955_s23, 3 }
   0x7   : > { %p1026_p3 = scmp.eq.s32.totalorder %s720_s24, 0  ;;  %s957_s29 = smov [#allocation3]  }
   0x8   : > { %s1110_s26 = smov (%p34_p1, %s32_s26), 0  ;;  %p1032_p4 = pnand %p722_p0, %p201_p2 }
   0x9   : > { %s237_s30 = sshll.u32 %s957_s29, 4  ;;  %s238_s30 = int_to_ptr.vmem [resolvable:$true] %s237_s30 }
   0xa   : > { %p812_p5 = pneg %p1032_p4  ;;  %s886_s7 = scalar_lea.vmem %s238_s30, 1024 }
   0xb   : > { %p887_p8 = scmp.ne.s32.totalorder %s238_s30, %s886_s7  ;;  %p894_p11 = scmp.lt.s32.totalorder %s238_s30, %s238_s30 }
   0xc   : > { %p813_p6 = pnand %p1026_p3, %p812_p5  ;;  %p895_p12 = scmp.lt.s32.totalorder %s886_s7, %s886_s7 }
   0xe   : > { %p877_p7 = pneg %p813_p6  ;;  %p896_p13 = por %p895_p12, %p894_p11 }
  0x10   : > { %p889_p9 = pnand %p887_p8, %p877_p7 }
  0x12   : > { %p890_p10 = pneg %p889_p9 }
  0x14   : > { %p897_p0 = pnand %p896_p13, %p890_p10 }
  0x16   : > { %900 = shalt.err (!%p897_p0)
}
  0x17   : > { %s958_s8 = smov 64   ;;  %s959_s9 = smov 4  }
  0x18   : > { %815 = dma.hbm_to_vmem [thread:$0]  (!%p813_p6), %s1101_s4, 1024, %s238_s30, [#allocation4], %s958_s8, %s958_s8, %s959_s9  }
  0x19   : > { %256 = sbr.rel (%p1032_p4) target bundleno = 678 (0x2a6), region = 44 }
  0x1e   : > { %938 = dma.done.wait (%p1026_p3), [#allocation4], 1024  }
  0x1f   : > { %940 = vsyncadd (%p1026_p3), [#allocation4], 4294966272  ;;  %v307_v0 = vld [vmem:[%s1098_s1] sm:$0xff]  ;;  %v308_v1 = vld [vmem:[%s1098_s1 + $0x8] sm:$0xff]  ;;  %p728_p1 = scmp.ne.s32.totalorder %s947_s21, 0 }
  0x21   : > { %312 = sbr.rel (%p728_p1) target bundleno = 251 (0xfb), region = 52 }
  0x26   : > { %v862_v2 = vld [vmem:[%s1099_s2] sm:$0xff]   ;;  %v960_v3 = vmov 0.0   ;;  %vm961_vm0 = vmmov 0   ;;  %vm328_vm1 = vcmask 130048   ;;  %v962_v5 = vmov 0  }
  0x27   : > { %772 = vmatprep.subr.bf16.mxu0 %v960_v3  ;;  %v863_v4 = vld [vmem:[%s1097_s0] sm:$0xff]   ;;  %774 = vmatprep.mubr.msk.bf16.mxu0 %vm961_vm0, %v960_v3 }
  0x28   : > { %773 = vmatpush3.bf16.msra.mxu0 %v862_v2  ;;  %861 = vset.pattern.permute.xlu0 %v962_v5  ;;  %v732_v8 = vld [vmem:[%s1100_s3] ss:$0 sm:$0xff] }
  0x29   : > { %375 = vperm.xlu0 %861, %v307_v0  }
  0x2b   : > { %775 = vmatmul.mubr.msk.bf16.vlgmr.msra.gmra.mxu0 %vm328_vm1, %v863_v4 }
  0x2d   : > { %380 = vperm.xlu0 %861, %v308_v1  }
  0xa4   : > { %v376_v6 = vpop.permute.xlu0 %375 }
  0xa8   : > { %v381_v12 = vpop.permute.xlu0 %380 }
  0xeb   : > { %v366_v7 = vpop.f32.mrf.mxu0 }
  0xec   : > { %v383_v9 = vmul.f32 %v376_v6, %v366_v7 }
  0xed   : > { %v776_v10 = vpop.f32.mrf.mxu0 }
  0xee   : > { %v392_v11 = vadd.f32 %v732_v8, %v383_v9 }
  0xef   : > { %v369_v13 = vpop.f32.mrf.mxu0 }
  0xf0   : > { %v384_v14 = vmul.f32 %v381_v12, %v369_v13  ;;  %v394_v16 = vmax.f32 %v392_v11, 0.0 }
  0xf1   : > { %v777_v15 = vpop.f32.mrf.mxu0 }
  0xf2   : > { %v393_v17 = vadd.f32 %v732_v8, %v384_v14  ;;  %v396_v19 = vmul.f32 %v394_v16, %v376_v6 }
  0xf4   : > { %v395_v18 = vmax.f32 %v393_v17, 0.0 }
  0xf6   : > { %v397_v20 = vmul.f32 %v395_v18, %v381_v12 }
  0xf8   : > { %v757_v21 = vpack.c.bf16 %v397_v20, %v396_v19 }
  0xfa   : > { %758 = vst [vmem:[#allocation2] sm:$0xff] %v757_v21  }
  0xfb PF: > { %p735_p2 = scmp.ne.s32.totalorder %s947_s21, 1 }
  0xfd   : > { %415 = sbr.rel (%p735_p2) target bundleno = 664 (0x298), region = 56 }
 0x102   : > { %v865_v22 = vld [vmem:[#allocation2] sm:$0xff]   ;;  %v963_v23 = vmov 0.0   ;;  %vm964_vm2 = vmmov 0   ;;  %vm431_vm3 = vcmask 130048   ;;  %v965_v25 = vmov 0   ;;  %v868_v27 = vld [vmem:[#allocation3 + $0x30] sm:$0xff]  }
 0x103   : > { %778 = vmatprep.subr.bf16.mxu0 %v963_v23  ;;  %v866_v24 = vld [vmem:[%s1097_s0] sm:$0xff]   ;;  %784 = vmatprep.subr.bf16.mxu1 %v963_v23  ;;  %v869_v28 = vld [vmem:[#allocation3 + $0x28] sm:$0xff]   ;;  %v870_v29 = vld [vmem:[#allocation3 + $0x20] sm:$0xff]  }
 0x104   : > { %779 = vmatpush3.bf16.msra.mxu0 %v865_v22  ;;  %780 = vmatprep.mubr.msk.bf16.mxu0 %vm964_vm2, %v963_v23  ;;  %v867_v26 = vld [vmem:[#allocation3 + $0x38] sm:$0xff]   ;;  %v872_v31 = vld [vmem:[#allocation3 + $0x10] sm:$0xff]   ;;  %v873_v32 = vld [vmem:[#allocation3 + $0x8] sm:$0xff]  }
 0x105   : > { %864 = vset.pattern.permute.xlu0 %v965_v25  ;;  %800 = vmatprep.mubr.msk.bf16.mxu1 %vm964_vm2, %v963_v23  ;;  %v871_v30 = vld [vmem:[#allocation3 + $0x18] sm:$0xff]   ;;  %v874_v33 = vld [vmem:[#allocation3] sm:$0xff]  }
 0x106   : > { %478 = vperm.xlu0 %864, %v307_v0   ;;  %785 = vmatpush3.bf16.msra.mxu1 %v867_v26  ;;  %v739_v43 = vld [vmem:[%s1102_s5] ss:$0 sm:$0xff] }
 0x107   : > { %781 = vmatmul.mubr.msk.bf16.vlgmr.msra.gmra.mxu0 %vm431_vm3, %v866_v24  ;;  %786 = vmatprep.subr.bf16.mxu1 %v963_v23 }
 0x10a   : > { %483 = vperm.xlu0 %864, %v308_v1   ;;  %787 = vmatpush3.bf16.msra.mxu1 %v868_v27 }
 0x10b   : > { %788 = vmatprep.subr.bf16.mxu1 %v963_v23 }
 0x10e   : > { %789 = vmatpush3.bf16.msra.mxu1 %v869_v28 }
 0x10f   : > { %790 = vmatprep.subr.bf16.mxu1 %v963_v23 }
 0x112   : > { %791 = vmatpush3.bf16.msra.mxu1 %v870_v29 }
 0x113   : > { %792 = vmatprep.subr.bf16.mxu1 %v963_v23 }
 0x116   : > { %793 = vmatpush3.bf16.msra.mxu1 %v871_v30 }
 0x117   : > { %794 = vmatprep.subr.bf16.mxu1 %v963_v23 }
 0x11a   : > { %795 = vmatpush3.bf16.msra.mxu1 %v872_v31 }
 0x11b   : > { %796 = vmatprep.subr.bf16.mxu1 %v963_v23 }
 0x11e   : > { %797 = vmatpush3.bf16.msra.mxu1 %v873_v32 }
 0x11f   : > { %798 = vmatprep.subr.bf16.mxu1 %v963_v23 }
 0x122   : > { %799 = vmatpush3.bf16.msra.mxu1 %v874_v33 }
 0x181   : > { %v479_v34 = vpop.permute.xlu0 %478 }
 0x185   : > { %v484_v37 = vpop.permute.xlu0 %483 }
 0x1c7   : > { %v469_v35 = vpop.f32.mrf.mxu0 }
 0x1c8   : > { %v486_v39 = vmul.f32 %v479_v34, %v469_v35 }
 0x1c9   : > { %v782_v36 = vpop.f32.mrf.mxu0 }
 0x1cb   : > { %v472_v38 = vpop.f32.mrf.mxu0 }
 0x1cc   : > { %v487_v40 = vmul.f32 %v484_v37, %v472_v38 }
 0x1cd   : > { %v783_v41 = vpop.f32.mrf.mxu0 }
 0x1ce   : > { %v488_v42 = vpack.c.bf16 %v487_v40, %v486_v39 }
 0x1d0   : > { %801 = vmatmul.mubr.bf16.vlgmr.msra.gmra.mxu1 %v488_v42 }
 0x290   : > { %v594_v44 = vpop.f32.mrf.mxu1 }
 0x291   : > { %v595_v45 = vadd.f32 %v739_v43, %v594_v44 }
 0x292   : > { %v802_v46 = vpop.f32.mrf.mxu1 }
 0x293   : > { %601 = vst [vmem:[#allocation6] sm:$0xff] %v595_v45 }
 0x294   : > { %v597_v47 = vpop.f32.mrf.mxu1 }
 0x295   : > { %v598_v48 = vadd.f32 %v739_v43, %v597_v47 }
 0x296   : > { %v803_v49 = vpop.f32.mrf.mxu1 }
 0x297   : > { %602 = vst [vmem:[#allocation6 + $0x8] sm:$0xff] %v598_v48 }
 0x298 PF: > { %p1074_p3 = scmp.eq.s32.totalorder %s720_s24, 1  ;;  %s966_s8 = smov [#allocation6]  }
 0x299   : > { %s618_s9 = sshll.u32 %s966_s8, 4  ;;  %s619_s9 = int_to_ptr.vmem [resolvable:$true] %s618_s9 }
 0x29a   : > { %s901_s10 = scalar_lea.vmem %s619_s9, 256  ;;  %s907_s11 = scalar_lea.vmem %s619_s9, 512 }
 0x29b   : > { %p902_p4 = scmp.ne.s32.totalorder %s619_s9, %s901_s10  ;;  %p908_p7 = scmp.lt.s32.totalorder %s619_s9, %s619_s9 }
 0x29c   : > { %p909_p8 = scmp.lt.s32.totalorder %s907_s11, %s901_s10 }
 0x29d   : > { %p903_p5 = pnand %p902_p4, %p1074_p3 }
 0x29e   : > { %p910_p9 = por %p909_p8, %p908_p7 }
 0x29f   : > { %p904_p6 = pneg %p903_p5 }
 0x2a1   : > { %p911_p10 = pnand %p910_p9, %p904_p6 }
 0x2a3   : > { %914 = shalt.err (!%p911_p10)
}
 0x2a4   : > { %s967_s12 = smov 128   ;;  %s968_s24 = smov 8  }
 0x2a5   : > { %809 = dma.vmem_to_hbm [thread:$0]  (%p1074_p3), %s619_s9, 256, %s1103_s6, [#allocation5], %s967_s12, %s967_s12, %s968_s24  }
 0x2a6 PF: > { %p823_p11 = scmp.ge.s32.totalorder %s955_s23, 2  ;;  %p824_p12 = scmp.eq.s32.totalorder %s721_s25, 1 }
 0x2a8   : > { %p817_p13 = pnand %p824_p12, %p823_p11 }
 0x2aa   : > { %p818_p0 = pneg %p817_p13 }
 0x2ac   : > { %942 = dma.done.wait (%p818_p0), [#allocation5], 256  }
 0x2ad   : > { %944 = vsyncadd (%p818_p0), [#allocation5], 4294967040  ;;  %s20_s23 = sadd.s32 1, %s955_s23   ;;  %s1107_s21 = smov %s951_s22 }
 0x2ae   : > { %p17_p1 = scmp.ge.s32.totalorder %s20_s23, 4   ;;  %s1108_s22 = smov %s1110_s26 }
 0x2b0   :  { %19 = sbr.rel (!%p17_p1) target bundleno = 4 (0x4), region = 96 }
 0x2b5   :  { %639 = vsyncpa [#allocation4], 1 }
 0x2b6   :  { %641 = vsyncpa [#allocation4 + $0x1], 1 }
 0x2b7   :  { %642 = vsyncpa [#allocation5], 1 }
 0x2b8   :  { %644 = vsyncpa [#allocation5 + $0x1], 1 }

</bundles_post_ra>
